<compile_context>
chip_gen: v7x
topology: tpu7x:2x2x1
jax: 0.10.0
libtpu: 0.0.40
codegen_flags: <defaults>
</compile_context>

<pallas_src>
import functools

import jax
import jax.numpy as jnp
from jax import lax
from jax.experimental import pallas as pl
from jax.experimental.pallas import tpu as pltpu


def _round_up(x, m):
    return ((x + m - 1) // m) * m


def _vmem_limit(need_bytes):
    # >= default scoped limit, and safe on v7x (64 MiB physical / TC).
    return int(min(max(need_bytes + (4 << 20), 32 << 20), 56 << 20))


def _choose_class_block(C, Ap, Cp):
    """Classes per kernel-1 grid step.

    Aim Y*Ap >= 256 (fill the MXU rows on v6e/v7x), keep the bf16 (Y*Ap, Ap)
    covariance block and the (Y, Ap, Cp) f32 temporaries a few MiB each.
    """
    y = 8
    while y < 128 and y * Ap < 256:
        y *= 2
    while y > 1 and (y * Ap * Ap * 2 > (6 << 20) or y * Ap * Cp * 4 > (6 << 20)):
        y //= 2
    # don't compute far more class rows than exist
    y = min(y, _round_up(C, 8))
    return max(1, y)


# --------------------------------------------------------------------------
# Kernel 1: per-class offset rows, Y classes per grid step.
#   offsets[y, c] = 0.5*L*(g_cc - 2*g_yc + g_yy) + L*((W dm_y)[c] - (W dm_y)[y])
# with g = W Sigma_y W^T  (Sigma symmetrized in the wrapper).
# --------------------------------------------------------------------------
def _make_offsets_kernel(Lambda, Y, Ap, Cp):
    def kernel(wtb_ref, wtf_ref, wy_ref, cov_ref, dm_ref, out_ref):
        i = pl.program_id(0)

        WTb = wtb_ref[...]                      # (Ap, Cp) bf16  (for the big matmul)
        WTf = wtf_ref[...]                      # (Ap, Cp) f32   (elementwise / delta)
        WY = wy_ref[...]                        # (Y, Ap)  f32   weight rows of this block
        dm = dm_ref[...]                        # (Y, Ap)  f32   mean_target - mean_source

        # M[y] = Sigma_y @ W^T for all Y classes in ONE MXU matmul (bf16 in, f32 acc).
        M = jnp.dot(cov_ref[...], WTb, preferred_element_type=jnp.float32)  # (Y*Ap, Cp)
        M3 = M.reshape(Y, Ap, Cp)                                           # (Y, Ap, Cp)

        # diag(W Sigma_y W^T)[c]  and  w_y^T Sigma_y w_c  (symmetric Sigma).
        diagG = jnp.sum(M3 * WTf[None, :, :], axis=1)                       # (Y, Cp)
        cross = jnp.sum(M3 * WY[:, :, None], axis=1)                        # (Y, Cp)
        U = jnp.dot(dm, WTf, preferred_element_type=jnp.float32)            # (Y, Cp)

        lane = lax.broadcasted_iota(jnp.int32, (Y, Cp), 1)
        row = lax.broadcasted_iota(jnp.int32, (Y, Cp), 0)
        own = lane == (i * Y + row)              # lane index == this row's class id

        gyy = jnp.sum(jnp.where(own, diagG, 0.0), axis=1, keepdims=True)    # w_y^T S w_y
        uyy = jnp.sum(jnp.where(own, U, 0.0), axis=1, keepdims=True)        # (W dm_y)[y]

        sig2 = diagG - 2.0 * cross + gyy
        delta = U - uyy
        out_ref[...] = (0.5 * Lambda) * sig2 + Lambda * delta

    return kernel


# --------------------------------------------------------------------------
# Kernel 2: augmented softmax cross-entropy, B samples per grid step.
# Grid = (2 core-halves, blocks); per-core loss sum kept in VMEM scratch and
# stored once at the last block of that half.
# --------------------------------------------------------------------------
def _make_ce_kernel(B, N, C, Ct, Cp, nb2):
    def kernel(ys_ref, lab_ref, off_ref, out_ref, acc_ref):
        c = pl.program_id(0)
        i = pl.program_id(1)

        @pl.when(i == 0)
        def _():
            acc_ref[...] = jnp.zeros_like(acc_ref)

        blk = c * nb2 + i                        # un-clamped global block id
        ys = ys_ref[...]                         # (B, Cp) f32 logits (lane-padded)
        lab = lab_ref[...]                       # (B, 1)  int32 labels

        # Gather offsets[label] with an in-kernel one-hot matmul (table resident).
        lane_t = lax.broadcasted_iota(jnp.int32, (B, Ct), 1)
        onehot = (lane_t == lab).astype(jnp.float32)                        # (B, Ct)
        gathered = jnp.dot(onehot, off_ref[...],
                           preferred_element_type=jnp.float32)              # (B, Cp)

        aug = ys + gathered

        lane = lax.broadcasted_iota(jnp.int32, (B, Cp), 1)
        rowi = lax.broadcasted_iota(jnp.int32, (B, 1), 0)
        valid = (blk * B + rowi) < N                                         # (B, 1)

        if Cp > C:                                # exclude padded class lanes from lse
            aug = jnp.where(lane < C, aug, -1e30)
        # neutralize ragged / out-of-range rows BEFORE exp (their data is garbage)
        aug = jnp.where(valid, aug, 0.0)

        m = jnp.max(aug, axis=1, keepdims=True)
        lse = m + jnp.log(jnp.sum(jnp.exp(aug - m), axis=1, keepdims=True))
        picked = jnp.sum(jnp.where(lane == lab, aug, 0.0), axis=1, keepdims=True)
        nll = jnp.where(valid, lse - picked, 0.0)                            # (B, 1)

        acc_ref[...] += jnp.sum(nll)

        @pl.when(i == pl.num_programs(1) - 1)
        def _():
            out_ref[...] = acc_ref[...].reshape(1, 1, 128)

    return kernel


@functools.partial(jax.jit, static_argnames=("Lambda",))
def cls_loss_pallas(weight, features, y_s, labels, Lambda,
                    mean_source, mean_target, covariance_target):
    del features  # only its logits y_s enter the loss (matches the PyTorch module)
    N, C = y_s.shape
    A = weight.shape[1]
    Lambda = float(Lambda)
    f32 = jnp.float32

    Ap = _round_up(A, 8)                 # feature axis on sublanes
    Cp = _round_up(C, 128)               # class axis lane-dense
    Y = _choose_class_block(C, Ap, Cp)   # classes per kernel-1 step
    Ct = _round_up(C, max(Y, 8))         # rows of the offsets table (multiple of Y)
    grid1 = Ct // Y

    # ---- kernel-1 inputs ------------------------------------------------
    w = weight.astype(f32)
    w_cp = jnp.zeros((Cp, Ap), f32).at[:C, :A].set(w)
    wt_f32 = w_cp.T                                           # (Ap, Cp)
    wt_bf16 = wt_f32.astype(jnp.bfloat16)
    wy = w_cp[:Ct]                                            # (Ct, Ap)

    # Symmetrize: x^T S x == x^T 0.5(S+S^T) x exactly, enables the single cross term.
    cov = covariance_target.astype(f32)
    cov = 0.5 * (cov + jnp.swapaxes(cov, 1, 2))
    cov_p = jnp.zeros((Ct, Ap, Ap), f32).at[:C, :A, :A].set(cov)
    cov2d = cov_p.reshape(Ct * Ap, Ap).astype(jnp.bfloat16)   # bf16 halves the HBM stream

    dm = mean_target.astype(f32) - mean_source.astype(f32)
    dm_p = jnp.zeros((Ct, Ap), f32).at[:C, :A].set(dm)

    cost1 = pl.CostEstimate(
        flops=2 * Ct * Ap * Ap * Cp + 6 * Ct * Ap * Cp,
        transcendentals=0,
        bytes_accessed=(Ct * Ap * Ap * 2 + Ap * Cp * 6
                        + 2 * Ct * Ap * 4 + Ct * Cp * 4),
    )
    need1 = (2 * Y * Ap * Ap * 2 + 2 * Ap * Cp * 6 + 4 * Y * Ap * 4
             + 2 * Y * Cp * 4 + 4 * Y * Ap * Cp * 4 + (1 << 20))

    offsets = pl.pallas_call(
        _make_offsets_kernel(Lambda, Y, Ap, Cp),
        out_shape=jax.ShapeDtypeStruct((Ct, Cp), f32),
        grid_spec=pltpu.PrefetchScalarGridSpec(
            num_scalar_prefetch=0,
            grid=(grid1,),
            in_specs=[
                pl.BlockSpec((Ap, Cp), lambda i: (0, 0)),       # W^T bf16 (resident)
                pl.BlockSpec((Ap, Cp), lambda i: (0, 0)),       # W^T f32  (resident)
                pl.BlockSpec((Y, Ap), lambda i: (i, 0)),        # weight rows of block
                pl.BlockSpec((Y * Ap, Ap), lambda i: (i, 0)),   # Y stacked covariances
                pl.BlockSpec((Y, Ap), lambda i: (i, 0)),        # delta-mean rows
            ],
            out_specs=pl.BlockSpec((Y, Cp), lambda i: (i, 0)),
        ),
        compiler_params=pltpu.CompilerParams(
            dimension_semantics=("parallel",),
            vmem_limit_bytes=_vmem_limit(need1)),
        cost_estimate=cost1,
    )(wt_bf16, wt_f32, wy, cov2d, dm_p)

    # ---- kernel-2 inputs (no row padding; ragged blocks masked in-kernel) --
    labels2d = jnp.clip(labels.astype(jnp.int32), 0, C - 1).reshape(N, 1)
    ys = y_s.astype(f32)
    if Cp != C:
        ys = jnp.pad(ys, ((0, 0), (0, Cp - C)))                 # lane-pad class axis

    B = min(1024, _round_up(N, 8))
    max_b = max(8, (((8 << 20) // (Cp * 4)) // 8) * 8)          # keep (B, Cp) blocks small
    B = max(8, min(B, max_b))
    n_blk = pl.cdiv(N, B)
    nb2 = pl.cdiv(n_blk, 2)                                     # blocks per TensorCore half
    last_blk = n_blk - 1

    def row_map(c, i):
        # clamp so the second half never issues a fully out-of-bounds DMA;
        # duplicated rows are masked in-kernel via the un-clamped block id.
        return (jnp.minimum(c * nb2 + i, last_blk), 0)

    rows = 2 * nb2 * B
    cost2 = pl.CostEstimate(
        flops=2 * rows * Ct * Cp + 10 * rows * Cp,
        transcendentals=rows * Cp,
        bytes_accessed=N * Cp * 4 + N * 4 + Ct * Cp * 4 + 2 * 128 * 4,
    )
    need2 = (2 * B * Cp * 4 + 2 * B * 128 * 4 + 2 * Ct * Cp * 4
             + 6 * B * Cp * 4 + (1 << 20))

    partial = pl.pallas_call(
        _make_ce_kernel(B, N, C, Ct, Cp, nb2),
        out_shape=jax.ShapeDtypeStruct((2, 1, 128), f32),
        grid_spec=pltpu.PrefetchScalarGridSpec(
            num_scalar_prefetch=0,
            grid=(2, nb2),
            in_specs=[
                pl.BlockSpec((B, Cp), row_map),                 # logits block
                pl.BlockSpec((B, 1), row_map),                  # labels block
                pl.BlockSpec((Ct, Cp), lambda c, i: (0, 0)),    # offsets table (resident)
            ],
            out_specs=pl.BlockSpec((1, 1, 128), lambda c, i: (c, 0, 0)),
            scratch_shapes=[pltpu.VMEM((1, 128), f32)],
        ),
        compiler_params=pltpu.CompilerParams(
            dimension_semantics=("parallel", "arbitrary"),
            vmem_limit_bytes=_vmem_limit(need2)),
        cost_estimate=cost2,
    )(ys, labels2d, offsets)

    # CrossEntropyLoss(reduction='mean'); sum the two per-core partials.
    return jnp.sum(partial[:, 0, 0]) / N


def cls_loss_reference(weight, features, y_s, labels, Lambda,
                       mean_source, mean_target, covariance_target):
    """Plain-JAX reference mirroring the PyTorch module."""
    del features
    w_y = weight[labels]                                      # (N, A)
    D = weight[None, :, :] - w_y[:, None, :]                  # (N, C, A)
    Sig = covariance_target[labels]                           # (N, A, A)
    sigma2 = Lambda * jnp.einsum('nca,nab,ncb->nc', D, Sig, D)
    dmean = (mean_target - mean_source)[labels]               # (N, A)
    delta = jnp.einsum('nca,na->nc', D, dmean)
    aug = y_s + 0.5 * sigma2 + Lambda * delta
    lse = jax.nn.logsumexp(aug, axis=-1)
    nll = lse - jnp.take_along_axis(aug, labels[:, None], axis=1)[:, 0]
    return jnp.mean(nll)


if __name__ == "__main__":
    N, C, A = 16, 8, 32      # batch, class_num, feature dim
    Lambda = 0.5

    key = jax.random.PRNGKey(0)
    k_w, k_x, k_l, k_ms, k_mt, k_cv = jax.random.split(key, 6)

    weight = 0.1 * jax.random.normal(k_w, (C, A), jnp.float32)        # fc.weight
    features = jax.random.normal(k_x, (N, A), jnp.float32)
    y_s = features @ weight.T                                          # fc(features) logits
    labels = jax.random.randint(k_l, (N,), 0, C)
    mean_source = jax.random.normal(k_ms, (C, A), jnp.float32)
    mean_target = jax.random.normal(k_mt, (C, A), jnp.float32)
    Bm = 0.1 * jax.random.normal(k_cv, (C, A, A), jnp.float32)
    covariance_target = jnp.einsum('cij,ckj->cik', Bm, Bm)             # PSD per class

    loss = cls_loss_pallas(weight, features, y_s, labels, Lambda,
                           mean_source, mean_target, covariance_target)
    loss = jax.block_until_ready(loss)

    ref = cls_loss_reference(weight, features, y_s, labels, Lambda,
                             mean_source, mean_target, covariance_target)
    assert abs(float(loss) - float(ref)) < 1e-3, (float(loss), float(ref))

    print("KERNEL_OK")
</pallas_src>

<mosaic_0001>
module attributes {stable_mosaic.version = 11 : i64} {
  func.func @kernel(%arg0: i32, %arg1: memref<32x128xbf16, #tpu.memory_space<vmem>>, %arg2: memref<32x128xf32, #tpu.memory_space<vmem>>, %arg3: memref<8x32xf32, #tpu.memory_space<vmem>>, %arg4: memref<256x32xbf16, #tpu.memory_space<vmem>>, %arg5: memref<8x32xf32, #tpu.memory_space<vmem>>, %arg6: memref<8x128xf32, #tpu.memory_space<vmem>>) attributes {dimension_semantics = [#tpu.dimension_semantics<parallel>], iteration_bounds = array<i64: 1>, scalar_prefetch = 0 : i64, scratch_operands = 0 : i64, tpu.core_type = #tpu.core_type<tc>, window_params = [{pipeline_mode = #tpu.pipeline_mode<synchronous>, transform_indices = @transform_0, window_bounds = array<i64: 32, 128>}, {pipeline_mode = #tpu.pipeline_mode<synchronous>, transform_indices = @transform_1, window_bounds = array<i64: 32, 128>}, {transform_indices = @transform_2, window_bounds = array<i64: 8, 32>}, {transform_indices = @transform_3, window_bounds = array<i64: 256, 32>}, {transform_indices = @transform_4, window_bounds = array<i64: 8, 32>}, {transform_indices = @transform_5, window_bounds = array<i64: 8, 128>}]} {
    %c0 = arith.constant 0 : index
    %c0_0 = arith.constant 0 : index
    %0 = vector.load %arg1[%c0, %c0_0] : memref<32x128xbf16, #tpu.memory_space<vmem>>, vector<32x128xbf16>
    %c0_1 = arith.constant 0 : index
    %c0_2 = arith.constant 0 : index
    %1 = vector.load %arg2[%c0_1, %c0_2] : memref<32x128xf32, #tpu.memory_space<vmem>>, vector<32x128xf32>
    %c0_3 = arith.constant 0 : index
    %c0_4 = arith.constant 0 : index
    %2 = vector.load %arg3[%c0_3, %c0_4] : memref<8x32xf32, #tpu.memory_space<vmem>>, vector<8x32xf32>
    %c0_5 = arith.constant 0 : index
    %c0_6 = arith.constant 0 : index
    %3 = vector.load %arg5[%c0_5, %c0_6] : memref<8x32xf32, #tpu.memory_space<vmem>>, vector<8x32xf32>
    %c0_7 = arith.constant 0 : index
    %c0_8 = arith.constant 0 : index
    %4 = vector.load %arg4[%c0_7, %c0_8] : memref<256x32xbf16, #tpu.memory_space<vmem>>, vector<256x32xbf16>
    %cst = arith.constant dense<0.000000e+00> : vector<256x128xf32>
    %5 = tpu.matmul %4, %0, %cst {dimension_numbers = #tpu.dot_dimension_numbers<[1], [0], [0], [1], [0, 0, 1, 1], [], []>} : vector<256x32xbf16>, vector<32x128xbf16>, vector<256x128xf32> -> vector<256x128xf32>
    %6 = vector.shape_cast %5 : vector<256x128xf32> to vector<8x32x128xf32>
    %7 = vector.shape_cast %1 : vector<32x128xf32> to vector<1x32x128xf32>
    %8 = vector.broadcast %7 : vector<1x32x128xf32> to vector<8x32x128xf32>
    %9 = arith.mulf %6, %8 : vector<8x32x128xf32>
    %cst_9 = arith.constant dense<0.000000e+00> : vector<8x128xf32>
    %10 = vector.multi_reduction <add>, %9, %cst_9 [1] : vector<8x32x128xf32> to vector<8x128xf32>
    %11 = vector.shape_cast %2 : vector<8x32xf32> to vector<8x32x1xf32>
    %12 = vector.broadcast %11 : vector<8x32x1xf32> to vector<8x32x128xf32>
    %13 = arith.mulf %6, %12 : vector<8x32x128xf32>
    %cst_10 = arith.constant dense<0.000000e+00> : vector<8x128xf32>
    %14 = vector.multi_reduction <add>, %13, %cst_10 [1] : vector<8x32x128xf32> to vector<8x128xf32>
    %cst_11 = arith.constant dense<0.000000e+00> : vector<8x128xf32>
    %15 = tpu.matmul %3, %1, %cst_11 {dimension_numbers = #tpu.dot_dimension_numbers<[1], [0], [0], [1], [0, 0, 1, 1], [], []>} : vector<8x32xf32>, vector<32x128xf32>, vector<8x128xf32> -> vector<8x128xf32>
    %16 = tpu.iota {dimensions = array<i32: 1>} : vector<8x128xi32>
    %17 = tpu.iota {dimensions = array<i32: 0>} : vector<8x128xi32>
    %c8_i32 = arith.constant 8 : i32
    %18 = arith.muli %arg0, %c8_i32 : i32
    %19 = vector.broadcast %18 : i32 to vector<8x128xi32>
    %20 = arith.addi %19, %17 : vector<8x128xi32>
    %21 = arith.cmpi eq, %16, %20 : vector<8x128xi32>
    %cst_12 = arith.constant 0.000000e+00 : f32
    %22 = vector.broadcast %cst_12 : f32 to vector<8x128xf32>
    %23 = arith.select %21, %10, %22 : vector<8x128xi1>, vector<8x128xf32>
    %cst_13 = arith.constant dense<0.000000e+00> : vector<8xf32>
    %24 = vector.multi_reduction <add>, %23, %cst_13 [1] : vector<8x128xf32> to vector<8xf32>
    %25 = vector.shape_cast %24 : vector<8xf32> to vector<8x1xf32>
    %cst_14 = arith.constant 0.000000e+00 : f32
    %26 = vector.broadcast %cst_14 : f32 to vector<8x128xf32>
    %27 = arith.select %21, %15, %26 : vector<8x128xi1>, vector<8x128xf32>
    %cst_15 = arith.constant dense<0.000000e+00> : vector<8xf32>
    %28 = vector.multi_reduction <add>, %27, %cst_15 [1] : vector<8x128xf32> to vector<8xf32>
    %29 = vector.shape_cast %28 : vector<8xf32> to vector<8x1xf32>
    %cst_16 = arith.constant 2.000000e+00 : f32
    %30 = vector.broadcast %cst_16 : f32 to vector<8x128xf32>
    %31 = arith.mulf %30, %14 : vector<8x128xf32>
    %32 = arith.subf %10, %31 : vector<8x128xf32>
    %33 = vector.broadcast %25 : vector<8x1xf32> to vector<8x128xf32>
    %34 = arith.addf %32, %33 : vector<8x128xf32>
    %35 = vector.broadcast %29 : vector<8x1xf32> to vector<8x128xf32>
    %36 = arith.subf %15, %35 : vector<8x128xf32>
    %cst_17 = arith.constant 2.500000e-01 : f32
    %37 = vector.broadcast %cst_17 : f32 to vector<8x128xf32>
    %38 = arith.mulf %37, %34 : vector<8x128xf32>
    %cst_18 = arith.constant 5.000000e-01 : f32
    %39 = vector.broadcast %cst_18 : f32 to vector<8x128xf32>
    %40 = arith.mulf %39, %36 : vector<8x128xf32>
    %41 = arith.addf %38, %40 : vector<8x128xf32>
    %c0_19 = arith.constant 0 : index
    %c0_20 = arith.constant 0 : index
    %42 = vector.load %arg6[%c0_19, %c0_20] : memref<8x128xf32, #tpu.memory_space<vmem>>, vector<8x128xf32>
    tpu.vector_store %arg6[%c0_19, %c0_20], %41 {strides = array<i32>} : memref<8x128xf32, #tpu.memory_space<vmem>>, vector<8x128xf32>,
    return
  }
  func.func @transform_0(%arg0: i32) -> (i32, i32) {
    %c0_i32 = arith.constant 0 : i32
    %c0_i32_0 = arith.constant 0 : i32
    %c0_i32_1 = arith.constant 0 : i32
    return %c0_i32, %c0_i32_0 : i32, i32
  }
  func.func @transform_1(%arg0: i32) -> (i32, i32) {
    %c0_i32 = arith.constant 0 : i32
    %c0_i32_0 = arith.constant 0 : i32
    %c0_i32_1 = arith.constant 0 : i32
    return %c0_i32, %c0_i32_0 : i32, i32
  }
  func.func @transform_2(%arg0: i32) -> (i32, i32) {
    %c0_i32 = arith.constant 0 : i32
    %c0_i32_0 = arith.constant 0 : i32
    return %arg0, %c0_i32 : i32, i32
  }
  func.func @transform_3(%arg0: i32) -> (i32, i32) {
    %c0_i32 = arith.constant 0 : i32
    %c0_i32_0 = arith.constant 0 : i32
    return %arg0, %c0_i32 : i32, i32
  }
  func.func @transform_4(%arg0: i32) -> (i32, i32) {
    %c0_i32 = arith.constant 0 : i32
    %c0_i32_0 = arith.constant 0 : i32
    return %arg0, %c0_i32 : i32, i32
  }
  func.func @transform_5(%arg0: i32) -> (i32, i32) {
    %c0_i32 = arith.constant 0 : i32
    %c0_i32_0 = arith.constant 0 : i32
    return %arg0, %c0_i32 : i32, i32
  }
}

module attributes {stable_mosaic.version = 11 : i64} {
  func.func @kernel(%arg0: i32, %arg1: i32, %arg2: memref<16x128xf32, #tpu.memory_space<vmem>>, %arg3: memref<16x1xi32, #tpu.memory_space<vmem>>, %arg4: memref<8x128xf32, #tpu.memory_space<vmem>>, %arg5: memref<1x1x128xf32, #tpu.memory_space<vmem>>, %arg6: memref<1x128xf32, #tpu.memory_space<vmem>>) attributes {dimension_semantics = [#tpu.dimension_semantics<parallel>, #tpu.dimension_semantics<arbitrary>], iteration_bounds = array<i64: 2, 1>, scalar_prefetch = 0 : i64, scratch_operands = 1 : i64, tpu.core_type = #tpu.core_type<tc>, window_params = [{transform_indices = @transform_0, window_bounds = array<i64: 16, 128>}, {transform_indices = @transform_1, window_bounds = array<i64: 16, 1>}, {pipeline_mode = #tpu.pipeline_mode<synchronous>, transform_indices = @transform_2, window_bounds = array<i64: 8, 128>}, {transform_indices = @transform_3, window_bounds = array<i64: 1, 1, 128>}]} {
    %c0_i32 = arith.constant 0 : i32
    %0 = arith.cmpi eq, %arg1, %c0_i32 : i32
    %1 = arith.extui %0 : i1 to i32
    %c0_i32_0 = arith.constant 0 : i32
    %2 = arith.cmpi ne, %1, %c0_i32_0 : i32
    scf.if %2 {
      %cst_21 = arith.constant 0.000000e+00 : f32
      %59 = vector.broadcast %cst_21 : f32 to vector<1x128xf32>
      %c0_22 = arith.constant 0 : index
      %c0_23 = arith.constant 0 : index
      %60 = vector.load %arg6[%c0_22, %c0_23] : memref<1x128xf32, #tpu.memory_space<vmem>>, vector<1x128xf32>
      tpu.vector_store %arg6[%c0_22, %c0_23], %59 {strides = array<i32>} : memref<1x128xf32, #tpu.memory_space<vmem>>, vector<1x128xf32>,
    } else {
    }
    %c1_i32 = arith.constant 1 : i32
    %3 = arith.muli %arg0, %c1_i32 : i32
    %4 = arith.addi %3, %arg1 : i32
    %c0 = arith.constant 0 : index
    %c0_1 = arith.constant 0 : index
    %5 = vector.load %arg2[%c0, %c0_1] : memref<16x128xf32, #tpu.memory_space<vmem>>, vector<16x128xf32>
    %c0_2 = arith.constant 0 : index
    %c0_3 = arith.constant 0 : index
    %6 = vector.load %arg3[%c0_2, %c0_3] : memref<16x1xi32, #tpu.memory_space<vmem>>, vector<16x1xi32>
    %7 = tpu.iota {dimensions = array<i32: 1>} : vector<16x8xi32>
    %8 = vector.broadcast %6 : vector<16x1xi32> to vector<16x8xi32>
    %9 = arith.cmpi eq, %7, %8 : vector<16x8xi32>
    %10 = arith.extui %9 : vector<16x8xi1> to vector<16x8xi32>
    %11 = arith.sitofp %10 : vector<16x8xi32> to vector<16x8xf32>
    %c0_4 = arith.constant 0 : index
    %c0_5 = arith.constant 0 : index
    %12 = vector.load %arg4[%c0_4, %c0_5] : memref<8x128xf32, #tpu.memory_space<vmem>>, vector<8x128xf32>
    %cst = arith.constant dense<0.000000e+00> : vector<16x128xf32>
    %13 = tpu.matmul %11, %12, %cst {dimension_numbers = #tpu.dot_dimension_numbers<[1], [0], [0], [1], [0, 0, 1, 1], [], []>} : vector<16x8xf32>, vector<8x128xf32>, vector<16x128xf32> -> vector<16x128xf32>
    %14 = arith.addf %5, %13 : vector<16x128xf32>
    %15 = tpu.iota {dimensions = array<i32: 1>} : vector<16x128xi32>
    %16 = tpu.iota {dimensions = array<i32: 0>} : vector<16x1xi32>
    %c16_i32 = arith.constant 16 : i32
    %17 = arith.muli %4, %c16_i32 : i32
    %18 = vector.broadcast %17 : i32 to vector<16x1xi32>
    %19 = arith.addi %18, %16 : vector<16x1xi32>
    %c16_i32_6 = arith.constant 16 : i32
    %20 = vector.broadcast %c16_i32_6 : i32 to vector<16x1xi32>
    %21 = arith.cmpi slt, %19, %20 : vector<16x1xi32>
    %c8_i32 = arith.constant 8 : i32
    %22 = vector.broadcast %c8_i32 : i32 to vector<16x128xi32>
    %23 = arith.cmpi slt, %15, %22 : vector<16x128xi32>
    %cst_7 = arith.constant -1.000000e+30 : f32
    %24 = vector.broadcast %cst_7 : f32 to vector<16x128xf32>
    %25 = arith.select %23, %14, %24 : vector<16x128xi1>, vector<16x128xf32>
    %cst_8 = arith.constant 0.000000e+00 : f32
    %26 = vector.shape_cast %21 : vector<16x1xi1> to vector<16x1xi1>
    %27 = vector.broadcast %26 : vector<16x1xi1> to vector<16x128xi1>
    %28 = vector.broadcast %cst_8 : f32 to vector<16x128xf32>
    %29 = arith.select %27, %25, %28 : vector<16x128xi1>, vector<16x128xf32>
    %cst_9 = arith.constant dense<0xFF800000> : vector<16xf32>
    %30 = vector.multi_reduction <maximumf>, %29, %cst_9 [1] : vector<16x128xf32> to vector<16xf32>
    %31 = vector.shape_cast %30 : vector<16xf32> to vector<16x1xf32>
    %32 = vector.broadcast %31 : vector<16x1xf32> to vector<16x128xf32>
    %33 = arith.subf %29, %32 : vector<16x128xf32>
    %34 = math.exp %33 : vector<16x128xf32>
    %cst_10 = arith.constant dense<0.000000e+00> : vector<16xf32>
    %35 = vector.multi_reduction <add>, %34, %cst_10 [1] : vector<16x128xf32> to vector<16xf32>
    %36 = vector.shape_cast %35 : vector<16xf32> to vector<16x1xf32>
    %37 = math.log %36 : vector<16x1xf32>
    %38 = arith.addf %31, %37 : vector<16x1xf32>
    %39 = vector.broadcast %6 : vector<16x1xi32> to vector<16x128xi32>
    %40 = arith.cmpi eq, %15, %39 : vector<16x128xi32>
    %cst_11 = arith.constant 0.000000e+00 : f32
    %41 = vector.broadcast %cst_11 : f32 to vector<16x128xf32>
    %42 = arith.select %40, %29, %41 : vector<16x128xi1>, vector<16x128xf32>
    %cst_12 = arith.constant dense<0.000000e+00> : vector<16xf32>
    %43 = vector.multi_reduction <add>, %42, %cst_12 [1] : vector<16x128xf32> to vector<16xf32>
    %44 = vector.shape_cast %43 : vector<16xf32> to vector<16x1xf32>
    %45 = arith.subf %38, %44 : vector<16x1xf32>
    %cst_13 = arith.constant 0.000000e+00 : f32
    %46 = vector.broadcast %cst_13 : f32 to vector<16x1xf32>
    %47 = arith.select %21, %45, %46 : vector<16x1xi1>, vector<16x1xf32>
    %c0_14 = arith.constant 0 : index
    %c0_15 = arith.constant 0 : index
    %48 = vector.load %arg6[%c0_14, %c0_15] : memref<1x128xf32, #tpu.memory_space<vmem>>, vector<1x128xf32>
    %49 = vector.shape_cast %47 : vector<16x1xf32> to vector<1x16x1xf32>
    %cst_16 = arith.constant dense<0.000000e+00> : vector<1xf32>
    %50 = vector.multi_reduction <add>, %49, %cst_16 [1, 2] : vector<1x16x1xf32> to vector<1xf32>
    %51 = vector.shape_cast %50 : vector<1xf32> to vector<1x1x1xf32>
    %52 = vector.extract %51[0, 0, 0] : f32 from vector<1x1x1xf32>
    %53 = vector.broadcast %52 : f32 to vector<1x128xf32>
    %54 = arith.addf %48, %53 : vector<1x128xf32>
    %c0_17 = arith.constant 0 : index
    %c0_18 = arith.constant 0 : index
    %55 = vector.load %arg6[%c0_17, %c0_18] : memref<1x128xf32, #tpu.memory_space<vmem>>, vector<1x128xf32>
    tpu.vector_store %arg6[%c0_17, %c0_18], %54 {strides = array<i32>} : memref<1x128xf32, #tpu.memory_space<vmem>>, vector<1x128xf32>,
    %c0_i32_19 = arith.constant 0 : i32
    %56 = arith.cmpi eq, %arg1, %c0_i32_19 : i32
    %57 = arith.extui %56 : i1 to i32
    %c0_i32_20 = arith.constant 0 : i32
    %58 = arith.cmpi ne, %57, %c0_i32_20 : i32
    scf.if %58 {
      %c0_21 = arith.constant 0 : index
      %c0_22 = arith.constant 0 : index
      %59 = vector.load %arg6[%c0_21, %c0_22] : memref<1x128xf32, #tpu.memory_space<vmem>>, vector<1x128xf32>
      %60 = vector.shape_cast %59 : vector<1x128xf32> to vector<1x1x128xf32>
      %c0_23 = arith.constant 0 : index
      %c0_24 = arith.constant 0 : index
      %c0_25 = arith.constant 0 : index
      %61 = vector.load %arg5[%c0_23, %c0_24, %c0_25] : memref<1x1x128xf32, #tpu.memory_space<vmem>>, vector<1x1x128xf32>
      tpu.vector_store %arg5[%c0_23, %c0_24, %c0_25], %60 {strides = array<i32>} : memref<1x1x128xf32, #tpu.memory_space<vmem>>, vector<1x1x128xf32>,
    } else {
    }
    return
  }
  func.func @transform_0(%arg0: i32, %arg1: i32) -> (i32, i32) {
    %c1_i32 = arith.constant 1 : i32
    %0 = arith.muli %arg0, %c1_i32 : i32
    %1 = arith.addi %0, %arg1 : i32
    %c0_i32 = arith.constant 0 : i32
    %2 = arith.minsi %1, %c0_i32 : i32
    %c0_i32_0 = arith.constant 0 : i32
    %c0_i32_1 = arith.constant 0 : i32
    return %2, %c0_i32_0 : i32, i32
  }
  func.func @transform_1(%arg0: i32, %arg1: i32) -> (i32, i32) {
    %c1_i32 = arith.constant 1 : i32
    %0 = arith.muli %arg0, %c1_i32 : i32
    %1 = arith.addi %0, %arg1 : i32
    %c0_i32 = arith.constant 0 : i32
    %2 = arith.minsi %1, %c0_i32 : i32
    %c0_i32_0 = arith.constant 0 : i32
    %c0_i32_1 = arith.constant 0 : i32
    return %2, %c0_i32_0 : i32, i32
  }
  func.func @transform_2(%arg0: i32, %arg1: i32) -> (i32, i32) {
    %c0_i32 = arith.constant 0 : i32
    %c0_i32_0 = arith.constant 0 : i32
    %c0_i32_1 = arith.constant 0 : i32
    return %c0_i32, %c0_i32_0 : i32, i32
  }
  func.func @transform_3(%arg0: i32, %arg1: i32) -> (i32, i32, i32) {
    %c0_i32 = arith.constant 0 : i32
    %c0_i32_0 = arith.constant 0 : i32
    %c0_i32_1 = arith.constant 0 : i32
    return %arg0, %c0_i32, %c0_i32_0 : i32, i32, i32
  }
}

</mosaic_0001>

<bundles_post_ra>
// kernel: sub.1
= control target key start
LH: loop header
LB: loop body
LE: loop exit
PB: predicated region body
PF: predicated region fallthrough
CT: control target
= control target key end

     0   :  { %s34_s0 = inlined_call_operand.vmem [shape: f32[8,32], index: 0, kind: input, shape index: {}]   ;;  %s35_s1 = inlined_call_operand.vmem [shape: f32[8,32], index: 1, kind: input, shape index: {}]   ;;  %s36_s2 = inlined_call_operand.vmem [shape: f32[8,32], index: 2, kind: output, shape index: {}]  }
   0x1   :  { %v3_v0 = vld [vmem:[%s34_s0] sm:$0xff] }
   0x2   :  { %v4_v1 = vld [vmem:[%s35_s1] sm:$0xff] }
   0x3   :  { %v7_v2 = vsub.f32 %v3_v0, %v4_v1 }
   0x5   :  { %9 = vst [vmem:[%s36_s2] sm:$0xff] %v7_v2 }

// kernel: cls_loss_pallas.3
= control target key start
LH: loop header
LB: loop body
LE: loop exit
PB: predicated region body
PF: predicated region fallthrough
CT: control target
= control target key end

     0   :  { %s598_s12 = smov 0   ;;  %s600_s13 = smov 0   ;;  %s652_s0 = inlined_call_operand.vmem [shape: f32[16,128], index: 0, kind: input, shape index: {}]   ;;  %s653_s1 = inlined_call_operand.vmem [shape: s32[16,1], index: 1, kind: input, shape index: {}]   ;;  %s654_s2 = inlined_call_operand.vmem [shape: f32[8,128], index: 2, kind: input, shape index: {}]   ;;  %s655_s3 = inlined_call_operand.vmem [shape: f32[2,1,128], index: 3, kind: output, shape index: {}]  }
   0x1   :  { %s602_s14 = smov 0  }
   0x2 LB: > { %s25_s15 = sadd.s32 1, %s570_s13  ;;  %p495_p0 = scmp.ge.s32.totalorder %s574_s14, 1  ;;  %s574_s14 = sphi %s602_s14, %s13_s14   ;;  %s570_s13 = sphi %s600_s13, %s657_s13   ;;  %s566_s12 = sphi %s598_s12, %s656_s12  }
   0x3   : > { %p27_p1 = scmp.ge.s32.totalorder %s25_s15, 2  ;;  %p185_p2 = scmp.lt.s32.totalorder %s574_s14, 3 }
   0x5   : > { %s659_s15 = smov (%p27_p1, %s25_s15), 0  ;;  %p186_p3 = pnand %p495_p0, %p185_p2 }
   0x6   : > { %p219_p4 = scmp.lt.s32.totalorder (!%p186_p3), %s566_s12, 0  ;;  %v576_v0 = vmov (!%p186_p3), 0   ;;  %v577_v3 = vmov (!%p186_p3), 0.0   ;;  %v269_v4 = vld [vmem:[%s654_s2] sm:$0xff] (!%p186_p3)  ;;  %v255_v5 = vlaneseq (!%p186_p3)  ;;  %vm270_vm0 = vcmask (!%p186_p3), 64512   ;;  %s504_s24 = sshll.u32 (!%p186_p3), %s566_s12, 4 }
   0x7   : > { %189 = sbr.rel (%p186_p3) target bundleno = 914 (0x392), region = 32  ;;  %543 = vset.pattern.permute.xlu0 (!%p186_p3), %v576_v0  ;;  %249 = vst [vmem:[#allocation2] sm:$0x1] (!%p186_p3), %v577_v3  ;;  %510 = vmatprep.subr.mxu0 (!%p186_p3), %v269_v4  ;;  %v358_v12 = vstv (!%p186_p3), %s504_s24  ;;  %vm403_vm6 = vcmask (!%p186_p3), 7168   ;;  %p242_p6 = scmp.lt.s32.totalorder (!%p186_p3), %s566_s12, 1 }
   0x8   : > { %511 = vmatpush3.msra.mxu0 (!%p186_p3), %v269_v4  ;;  %v256_v6 = vand.u32 (!%p186_p3), 127, %v255_v5  ;;  %v355_v11 = vshrl.u32 (!%p186_p3), %v255_v5, 7 }
   0xa   : > { %v359_v14 = vadd.s32 (!%p186_p3), %v358_v12, %v355_v11  ;;  %v356_v15 = vadd.s32 (!%p186_p3), 8, %v355_v11  ;;  %vm363_vm3 = vcmp.lt.s32.totalorder (!%p186_p3), %v256_v6, 8 }
   0xc   : > { %vm361_vm4 = vcmp.lt.s32.totalorder (!%p186_p3), %v359_v14, 16  ;;  %v360_v21 = vadd.s32 (!%p186_p3), %v358_v12, %v356_v15 }
   0xe   : > { %s220_s16 = scalar_select %p219_p4, %s566_s12, 0  ;;  %vm362_vm5 = vcmp.lt.s32.totalorder %v360_v21, 16  ;;  %v402_v60 = vld [vmem:[#allocation2] sm:$0x1] }
   0xf   : > { %s663_s12 = smov (!%p242_p6, %s566_s12), 1 }
  0x10   : > { %s496_s17 = sshll.u32 %s220_s16, 1  ;;  %s244_s4 = scalar_lea.vmem %s655_s3, %s663_s12 }
  0x11   : > { %p222_p5 = scmp.lt.s32.totalorder %s496_s17, 1 }
  0x13   : > { %s661_s17 = smov (!%p222_p5, %s496_s17), 1 }
  0x14   : > { %s497_s18 = sshll.u32 %s661_s17, 3 }
  0x15   : > { %s237_s21 = scalar_lea.vmem %s653_s1, %s497_s18  ;;  %s225_s27 = scalar_lea.vmem %s652_s0, %s497_s18 }
  0x16   : > { %v253_v1 = vld [vmem:[%s237_s21] sm:$0xff]  ;;  %v254_v2 = vld [vmem:[%s237_s21 + $0x8] sm:$0xff] }
  0x17   : > { %258 = vperm.xlu0 %543, %v253_v1   ;;  %v252_v13 = vld [vmem:[%s225_s27 + $0x8] sm:$0xff]  ;;  %v251_v16 = vld [vmem:[%s225_s27] sm:$0xff] }
  0x1b   : > { %261 = vperm.xlu0 %543, %v254_v2  }
  0x96   : > { %v259_v7 = vpop.permute.xlu0 %258 }
  0x97   : > { %vm263_vm1 = vcmp.eq.s32.totalorder %v256_v6, %v259_v7 }
  0x98   : > { %v500_v8 = vsel %vm263_vm1, 1.0, %v577_v3 }
  0x99   : > { %512 = vmatprep.mubr.msk.f32.mxu0 %vm270_vm0, %v500_v8 }
  0x9a   : > { %v262_v9 = vpop.permute.xlu0 %261 }
  0x9b   : > { %vm264_vm2 = vcmp.eq.s32.totalorder %v256_v6, %v262_v9 }
  0x9c   : > { %v501_v10 = vsel %vm264_vm2, 1.0, %v577_v3 }
  0x9d   : > { %513 = vmatmul.mubr.msk.f32.vlgmr.msra.gmra.mrb[0].mxu0 %vm270_vm0, %v501_v10 }
 0x170   : > { %v514_v17 = vpop.f32.mrb[0].mxu0 }
 0x171   : > { %v353_v18 = vadd.f32 %v514_v17, %v252_v13  ;;  %v343_v19 = vpop.f32.mrb[1].mxu0 }
 0x172   : > { %v352_v20 = vadd.f32 %v343_v19, %v251_v16 }
 0x173   : > { %v365_v24 = vsel %vm363_vm3, %v353_v18, -1e+30 }
 0x174   : > { %v364_v22 = vsel %vm363_vm3, %v352_v20, -1e+30  ;;  %v371_v25 = vsel %vm362_vm5, %v365_v24, 0.0 }
 0x175   : > { %v370_v23 = vsel %vm361_vm4, %v364_v22, 0.0  ;;  %v393_v35 = vsel %vm264_vm2, %v371_v25, 0.0 }
 0x176   : > { %372 = vmax.xlane.f32.xlu1 %v370_v23  ;;  %v392_v34 = vsel %vm263_vm1, %v370_v23, 0.0 }
 0x17a   : > { %374 = vmax.xlane.f32.xlu1 %v371_v25 }
 0x203   : > { %v373_v26 = vpop.xlane.xlu1 %372 }
 0x204   : > { %v376_v27 = vsub.f32 %v370_v23, %v373_v26 }
 0x206   : > { %v378_v28 = vmul.f32 1.442695, %v376_v27 }
 0x207   : > { %v375_v29 = vpop.xlane.xlu1 %374 }
 0x208   : > { %544 = vpow2.f32 %v378_v28  ;;  %v377_v30 = vsub.f32 %v371_v25, %v375_v29 }
 0x20a   : > { %v380_v31 = vmul.f32 1.442695, %v377_v30 }
 0x20c   : > { %546 = vpow2.f32 %v380_v31 }
 0x212   : > { %v545_v32 = vpop.eup %544 }
 0x213   : > { %382 = vadd.xlane.f32.xlu0 %v545_v32 }
 0x216   : > { %v547_v33 = vpop.eup %546 }
 0x217   : > { %384 = vadd.xlane.f32.xlu1 %v547_v33 }
 0x21b   : > { %394 = vadd.xlane.f32.xlu1 %v392_v34 }
 0x21f   : > { %396 = vadd.xlane.f32.xlu1 %v393_v35 }
 0x2a0   : > { %v383_v36 = vpop.xlane.xlu0 %382 }
 0x2a1   : > { %548 = vlog2.f32 %v383_v36 }
 0x2a4   : > { %v385_v37 = vpop.xlane.xlu1 %384 }
 0x2a5   : > { %550 = vlog2.f32 %v385_v37 }
 0x2a8   : > { %v395_v40 = vpop.xlane.xlu1 %394 }
 0x2ab   : > { %v549_v38 = vpop.eup %548 }
 0x2ac   : > { %v387_v39 = vmul.f32 0.6931472, %v549_v38  ;;  %v397_v46 = vpop.xlane.xlu1 %396 }
 0x2ae   : > { %v390_v41 = vadd.f32 %v387_v39, %v373_v26 }
 0x2af   : > { %v551_v42 = vpop.eup %550 }
 0x2b0   : > { %v389_v43 = vmul.f32 0.6931472, %v551_v42  ;;  %v398_v44 = vsub.f32 %v390_v41, %v395_v40 }
 0x2b2   : > { %v391_v45 = vadd.f32 %v389_v43, %v375_v29  ;;  %v400_v47 = vsel %vm361_vm4, %v398_v44, 0.0 }
 0x2b3   : > { %v404_v50 = vsel %vm403_vm6, %v400_v47, 0.0 }
 0x2b4   : > { %v399_v48 = vsub.f32 %v391_v45, %v397_v46 }
 0x2b6   : > { %v401_v49 = vsel %vm362_vm5, %v399_v48, 0.0 }
 0x2b7   : > { %v405_v51 = vsel %vm403_vm6, %v401_v49, 0.0 }
 0x2b8   : > { %v406_v52 = vadd.f32 %v405_v51, %v404_v50 }
 0x2ba   : > { %407 = vadd.xlane.f32.xlu1 %v406_v52 }
 0x347   : > { %v408_v53 = vpop.xlane.xlu1 %407 }
 0x348   : > { %v409_v54 = vrot.slane %v408_v53, 4 }
 0x34a   : > { %v410_v55 = vadd.f32 %v409_v54, %v408_v53 }
 0x34c   : > { %v411_v56 = vrot.slane %v410_v55, 2 }
 0x34e   : > { %v412_v57 = vadd.f32 %v411_v56, %v410_v55 }
 0x350   : > { %v413_v58 = vrot.slane %v412_v57, 1 }
 0x352   : > { %v414_v59 = vadd.f32 %v413_v58, %v412_v57 }
 0x354   : > { %515 = vpush %v414_v59 }
 0x385   : > { %s516_s28 = spop %515 }
 0x386   : > { %v416_v61 = vstv %s516_s28 }
 0x387   : > { %v417_v62 = vadd.f32 %v416_v61, %v402_v60 }
 0x389   : > { %418 = vst [vmem:[#allocation2] sm:$0x1] %v417_v62 }
 0x390   : > { %v422_v63 = vld [vmem:[#allocation2] sm:$0x1] }
 0x391   : > { %423 = vst [vmem:[%s244_s4] sm:$0x1] %v422_v63 }
 0x392 PF: > { %s13_s14 = sadd.s32 1, %s574_s14   ;;  %s656_s12 = smov %s570_s13 }
 0x393   : > { %p10_p7 = scmp.ge.s32.totalorder %s13_s14, 4   ;;  %s657_s13 = smov %s659_s15 }
 0x395   :  { %12 = sbr.rel (!%p10_p7) target bundleno = 2 (0x2), region = 73 }

// kernel: cls_loss_pallas.2
= control target key start
LH: loop header
LB: loop body
LE: loop exit
PB: predicated region body
PF: predicated region fallthrough
CT: control target
= control target key end

     0   :  { %vm155_vm0 = vcmask 261120   ;;  %v1073_v8 = vmov 0.0|0.0   ;;  %v469_v9 = vlaneseq  ;;  %vm1074_vm1 = vmmov 0   ;;  %s1437_s0 = inlined_call_operand.vmem [shape: bf16[32,128], index: 0, kind: input, shape index: {}]   ;;  %s1438_s3 = inlined_call_operand.vmem [shape: bf16[256,32], index: 3, kind: input, shape index: {}]   ;;  %s1439_s1 = inlined_call_operand.vmem [shape: f32[32,128], index: 1, kind: input, shape index: {}]   ;;  %s1440_s2 = inlined_call_operand.vmem [shape: f32[8,32], index: 2, kind: input, shape index: {}]   ;;  %s1441_s4 = inlined_call_operand.vmem [shape: f32[8,32], index: 4, kind: input, shape index: {}]   ;;  %s1442_s5 = inlined_call_operand.vmem [shape: f32[8,128], index: 5, kind: output, shape index: {}]  }
   0x1   :  { %v1055_v0 = vld [vmem:[%s1437_s0] sm:$0xff]   ;;  %v1056_v1 = vld [vmem:[%s1437_s0 + $0x8] sm:$0xff]   ;;  %v1058_v3 = vld [vmem:[%s1438_s3 + $0x50] sm:$0xff]   ;;  %v1075_v30 = vmov 0.0   ;;  %vm814_vm3 = vcmask 1041409   ;;  %vm816_vm4 = vcmask 1042434  }
   0x2   :  { %995 = vmatprep.subr.bf16.mxu0 %v1055_v0  ;;  %1048 = vmatprep.subr.bf16.mxu1 %v1055_v0  ;;  %v1057_v2 = vld [vmem:[%s1438_s3] sm:$0xff]   ;;  %v1059_v4 = vld [vmem:[%s1438_s3 + $0x8] sm:$0xff]   ;;  %v1060_v5 = vld [vmem:[%s1438_s3 + $0x58] sm:$0xff]   ;;  %v1143_v12 = vshrl.u32 %v469_v9, 7  ;;  %vm818_vm5 = vcmask 1043459   ;;  %vm820_vm6 = vcmask 1044484  }
   0x3   :  { %996 = vmatpush3.bf16.msra.mxu0 %v1055_v0  ;;  %1050 = vmatpush3.bf16.msra.mxu1 %v1055_v0  ;;  %v1061_v6 = vld [vmem:[%s1438_s3 + $0x10] sm:$0xff]   ;;  %v1062_v7 = vld [vmem:[%s1438_s3 + $0x60] sm:$0xff]   ;;  %v1063_v10 = vld [vmem:[%s1438_s3 + $0x18] sm:$0xff]   ;;  %vm822_vm7 = vcmask 1045509   ;;  %vm824_vm8 = vcmask 1046534   ;;  %vm826_vm9 = vcmask 1047559  }
   0x4   :  { %997 = vmatprep.subr.bf16.mxu0 %v1056_v1  ;;  %1049 = vmatprep.subr.bf16.mxu1 %v1056_v1  ;;  %v1064_v11 = vld [vmem:[%s1438_s3 + $0x68] sm:$0xff]   ;;  %v1065_v13 = vld [vmem:[%s1438_s3 + $0x20] sm:$0xff]   ;;  %v1066_v14 = vld [vmem:[%s1438_s3 + $0x70] sm:$0xff]   ;;  %v490_v20 = vsub.s32 1, %v1143_v12  ;;  %v509_v21 = vsub.s32 2, %v1143_v12  ;;  %v471_v29 = vsub.s32 0, %v1143_v12 }
   0x5   :  { %999 = vmatprep.mubr.msk.bf16.mxu0 %vm155_vm0, %v1057_v2  ;;  %1019 = vmatprep.mubr.msk.bf16.mxu1 %vm155_vm0, %v1058_v3  ;;  %v1154_v15 = vld [vmem:[%s1439_s1] sm:$0xff]  ;;  %v1159_v16 = vld [vmem:[%s1439_s1 + $0x8] sm:$0xff]  ;;  %v1164_v17 = vld [vmem:[%s1439_s1 + $0x10] sm:$0xff]  ;;  %v528_v33 = vsub.s32 3, %v1143_v12  ;;  %v547_v37 = vsub.s32 4, %v1143_v12  ;;  %v566_v40 = vsub.s32 5, %v1143_v12 }
   0x6   :  { %v1043_v18 = vpack.c.bf16 %v1159_v16, %v1154_v15  ;;  %v1171_v19 = vld [vmem:[%s1439_s1 + $0x18] sm:$0xff]  ;;  %v29_v23 = vld [vmem:[%s1440_s2] sm:$0xff]  ;;  %v1067_v26 = vld [vmem:[%s1438_s3 + $0x28] sm:$0xff]   ;;  %v585_v42 = vsub.s32 6, %v1143_v12  ;;  %v604_v44 = vsub.s32 7, %v1143_v12 }
   0x7   :  { %998 = vmatpush3.bf16.msra.mxu0 %v1056_v1  ;;  %1051 = vmatpush3.bf16.msra.mxu1 %v1056_v1  ;;  %v1046_v22 = vpack.c.bf16 %v1171_v19, %v1164_v17  ;;  %v491_v24 = vrot.slane %v29_v23, %v490_v20  ;;  %v510_v25 = vrot.slane %v29_v23, %v509_v21  ;;  %v1068_v27 = vld [vmem:[%s1438_s3 + $0x78] sm:$0xff]   ;;  %v1069_v28 = vld [vmem:[%s1438_s3 + $0x30] sm:$0xff]   ;;  %v30_v34 = vld [vmem:[%s1441_s4] sm:$0xff] }
   0x8   :  { %1042 = vmatprep.subr.bf16.mxu1 %v1073_v8  ;;  %v472_v31 = vrot.slane %v29_v23, %v471_v29  ;;  %v1070_v32 = vld [vmem:[%s1438_s3 + $0x38] sm:$0xff]   ;;  %v1071_v35 = vld [vmem:[%s1438_s3 + $0x40] sm:$0xff]   ;;  %v529_v36 = vrot.slane %v29_v23, %v528_v33  ;;  %v1072_v38 = vld [vmem:[%s1438_s3 + $0x48] sm:$0xff]   ;;  %v548_v39 = vrot.slane %v29_v23, %v547_v37  ;;  %v567_v41 = vrot.slane %v29_v23, %v566_v40 }
   0x9   :  { %493 = vbcast.lane.b32.xlu0 %v491_v24, 256  ;;  %512 = vbcast.lane.b32.xlu1 %v510_v25, 256  ;;  %v1217_v43 = vrot.slane %v29_v23, %v585_v42  ;;  %v1222_v45 = vrot.slane %v29_v23, %v604_v44 }
   0xa   :  { %1000 = vmatmul.mubr.msk.bf16.vlgmr.msra.gmra.mrb[0].mxu0 %vm155_vm0, %v1059_v4  ;;  %1020 = vmatmul.mubr.msk.bf16.vlgmr.msra.gmra.mrb[0].mxu1 %vm155_vm0, %v1060_v5 }
   0xb   :  { %1003 = vmatprep.mubr.msk.bf16.mxu0 %vm155_vm0, %v1061_v6  ;;  %1023 = vmatprep.mubr.msk.bf16.mxu1 %vm155_vm0, %v1062_v7 }
   0xc   :  { %1044 = vmatpush3.bf16.msra.mxu1 %v1043_v18 }
   0xd   :  { %1045 = vmatprep.subr.bf16.mxu1 %v1073_v8  ;;  %497 = vbcast.lane.b32.xlu0 %v491_v24, 264 }
   0xe   :  { %516 = vbcast.lane.b32.xlu1 %v510_v25, 264 }
  0x10   :  { %1047 = vmatpush3.bf16.msra.mxu1 %v1046_v22 }
  0x11   :  { %474 = vbcast.lane.b32.xlu0 %v472_v31, 256 }
  0x12   :  { %1004 = vmatmul.mubr.msk.bf16.gmra.mrb[4].mxu0 %vm155_vm0, %v1063_v10  ;;  %1024 = vmatmul.mubr.msk.bf16.gmra.mrb[4].mxu1 %vm155_vm0, %v1064_v11 }
  0x13   :  { %1007 = vmatprep.mubr.msk.bf16.mxu0 %vm155_vm0, %v1065_v13  ;;  %1027 = vmatprep.mubr.msk.bf16.mxu1 %vm155_vm0, %v1066_v14 }
  0x14   :  { %478 = vbcast.lane.b32.xlu1 %v472_v31, 264 }
  0x15   :  { %501 = vbcast.lane.b32.xlu0 %v491_v24, 272 }
  0x18   :  { %531 = vbcast.lane.b32.xlu1 %v529_v36, 256 }
  0x19   :  { %535 = vbcast.lane.b32.xlu0 %v529_v36, 264 }
  0x1a   :  { %1008 = vmatmul.mubr.msk.bf16.gmra.mrb[8].mxu0 %vm155_vm0, %v1067_v26  ;;  %1028 = vmatmul.mubr.msk.bf16.gmra.mrb[8].mxu1 %vm155_vm0, %v1068_v27 }
  0x1b   :  { %1011 = vmatprep.mubr.msk.bf16.mxu0 %vm155_vm0, %v1069_v28  ;;  %1039 = vmatprep.mubr.msk.f32.mxu1 %vm1074_vm1, %v1075_v30 }
  0x1c   :  { %520 = vbcast.lane.b32.xlu1 %v510_v25, 272 }
  0x1d   :  { %550 = vbcast.lane.b32.xlu0 %v548_v39, 256 }
  0x20   :  { %554 = vbcast.lane.b32.xlu1 %v548_v39, 264 }
  0x21   :  { %482 = vbcast.lane.b32.xlu0 %v472_v31, 272 }
  0x22   :  { %1012 = vmatmul.mubr.msk.bf16.gmra.mrb[12].mxu0 %vm155_vm0, %v1070_v32  ;;  %1040 = vmatmul.mubr.msk.f32.vlgmr.msra.gmra.mrb[12].mxu1 %vm155_vm0, %v30_v34 }
  0x23   :  { %1015 = vmatprep.mubr.msk.bf16.mxu0 %vm155_vm0, %v1071_v35 }
  0x24   :  { %505 = vbcast.lane.b32.xlu1 %v491_v24, 280 }
  0x25   :  { %539 = vbcast.lane.b32.xlu0 %v529_v36, 272 }
  0x28   :  { %569 = vbcast.lane.b32.xlu1 %v567_v41, 256 }
  0x29   :  { %573 = vbcast.lane.b32.xlu0 %v567_v41, 264 }
  0x2a   :  { %1016 = vmatmul.mubr.msk.bf16.gmra.mrb[16].mxu0 %vm155_vm0, %v1072_v38 }
  0x2c   :  { %524 = vbcast.lane.b32.xlu1 %v510_v25, 280 }
  0x2d   :  { %558 = vbcast.lane.b32.xlu0 %v548_v39, 272 }
  0x30   :  { %588 = vbcast.lane.b32.xlu1 %v1217_v43, 256 }
  0x31   :  { %592 = vbcast.lane.b32.xlu0 %v1217_v43, 264 }
  0x34   :  { %486 = vbcast.lane.b32.xlu1 %v472_v31, 280 }
  0x35   :  { %543 = vbcast.lane.b32.xlu0 %v529_v36, 280 }
  0x38   :  { %577 = vbcast.lane.b32.xlu1 %v567_v41, 272 }
  0x39   :  { %607 = vbcast.lane.b32.xlu0 %v1222_v45, 256 }
  0x3c   :  { %611 = vbcast.lane.b32.xlu1 %v1222_v45, 264 }
  0x3d   :  { %562 = vbcast.lane.b32.xlu0 %v548_v39, 280 }
  0x40   :  { %596 = vbcast.lane.b32.xlu1 %v1217_v43, 272 }
  0x41   :  { %581 = vbcast.lane.b32.xlu0 %v567_v41, 280 }
  0x44   :  { %615 = vbcast.lane.b32.xlu1 %v1222_v45, 272 }
  0x7b   :  { %v1228_v46 = vpop.permute.xlu0 %493  ;;  %v1232_v48 = vpop.permute.xlu1 %512 }
  0x7f   :  { %v1230_v47 = vpop.permute.xlu0 %497 }
  0x80   :  { %v1234_v50 = vpop.permute.xlu1 %516 }
  0x83   :  { %v475_v49 = vpop.permute.xlu0 %474 }
  0x86   :  { %v479_v52 = vpop.permute.xlu1 %478 }
  0x87   :  { %v1236_v51 = vpop.permute.xlu0 %501 }
  0x8a   :  { %v1240_v54 = vpop.permute.xlu1 %531 }
  0x8b   :  { %v1238_v53 = vpop.permute.xlu0 %535 }
  0x8e   :  { %v1244_v56 = vpop.permute.xlu1 %520 }
  0x8f   :  { %v1242_v55 = vpop.permute.xlu0 %550 }
  0x92   :  { %v1246_v58 = vpop.permute.xlu1 %554 }
  0x93   :  { %v483_v57 = vpop.permute.xlu0 %482 }
  0x96   :  { %v1250_v60 = vpop.permute.xlu1 %505 }
  0x97   :  { %v1248_v59 = vpop.permute.xlu0 %539 }
  0x9a   :  { %v570_v62 = vpop.permute.xlu1 %569 }
  0x9b   :  { %v574_v61 = vpop.permute.xlu0 %573 }
  0x9e   :  { %v1254_v0 = vpop.permute.xlu1 %524 }
  0x9f   :  { %v1252_v63 = vpop.permute.xlu0 %558 }
  0xa2   :  { %v1258_v2 = vpop.permute.xlu1 %588 }
  0xa3   :  { %v1256_v1 = vpop.permute.xlu0 %592 }
  0xa6   :  { %v487_v4 = vpop.permute.xlu1 %486 }
  0xa7   :  { %v1260_v3 = vpop.permute.xlu0 %543 }
  0xaa   :  { %v578_v6 = vpop.permute.xlu1 %577 }
  0xab   :  { %v1262_v5 = vpop.permute.xlu0 %607 }
  0xae   :  { %v1266_v8 = vpop.permute.xlu1 %611 }
  0xaf   :  { %v1264_v7 = vpop.permute.xlu0 %562 }
  0xb3   :  { %v582_v33 = vpop.permute.xlu0 %581 }
  0xdd   :  { %v1001_v10 = vpop.f32.mrb[0].mxu0  ;;  %v1021_v11 = vpop.f32.mrb[0].mxu1 }
  0xde   :  { %v238_v13 = vpop.f32.mrb[1].mxu0  ;;  %v318_v14 = vpop.f32.mrb[1].mxu1  ;;  %v387_v26 = vmul.f32 %v1021_v11, %v1164_v17  ;;  %v643_v28 = vmul.f32 %v1021_v11, %v578_v6  ;;  %v367_v34 = vmul.f32 %v1001_v10, %v1164_v17  ;;  %v623_v35 = vmul.f32 %v1001_v10, %v483_v57 }
  0xdf   :  { %v1002_v18 = vpop.f32.mrb[2].mxu0  ;;  %v385_v20 = vmul.f32 %v318_v14, %v1154_v15  ;;  %v641_v21 = vmul.f32 %v570_v62, %v318_v14  ;;  %v1022_v22 = vpop.f32.mrb[2].mxu1  ;;  %v365_v23 = vmul.f32 %v238_v13, %v1154_v15  ;;  %v621_v24 = vmul.f32 %v475_v49, %v238_v13 }
  0xe0   :  { %v241_v25 = vpop.f32.mrb[3].mxu0  ;;  %v321_v27 = vpop.f32.mrb[3].mxu1  ;;  %v388_v36 = vmul.f32 %v1022_v22, %v1171_v19  ;;  %v368_v41 = vmul.f32 %v1002_v18, %v1171_v19  ;;  %v624_v42 = vmul.f32 %v1002_v18, %v487_v4  ;;  %v644_v44 = vmul.f32 %v1022_v22, %v582_v33 }
  0xe1   :  { %v366_v29 = vmul.f32 %v241_v25, %v1159_v16  ;;  %v622_v30 = vmul.f32 %v479_v52, %v241_v25  ;;  %v386_v31 = vmul.f32 %v321_v27, %v1159_v16  ;;  %v642_v32 = vmul.f32 %v574_v61, %v321_v27  ;;  %v597_v49 = vpop.permute.xlu1 %596 }
  0xe3   :  { %v397_v37 = vadd.f32 %v366_v29, %v365_v23  ;;  %v653_v38 = vadd.f32 %v622_v30, %v621_v24  ;;  %v442_v39 = vadd.f32 %v386_v31, %v385_v20  ;;  %v698_v40 = vadd.f32 %v642_v32, %v641_v21 }
  0xe4   :  { %v1278_v23 = vand.u32 127, %v469_v9 }
  0xe5   :  { %v398_v62 = vadd.f32 %v397_v37, %v367_v34  ;;  %v654_v52 = vadd.f32 %v653_v38, %v623_v35  ;;  %v443_v6 = vadd.f32 %v442_v39, %v387_v26  ;;  %v1005_v11 = vpop.f32.mrb[4].mxu0  ;;  %v699_v61 = vadd.f32 %v698_v40, %v643_v28  ;;  %v1025_v13 = vpop.f32.mrb[4].mxu1 }
  0xe6   :  { %v371_v14 = vmul.f32 %v1005_v11, %v1164_v17  ;;  %v254_v57 = vpop.f32.mrb[5].mxu0  ;;  %v334_v10 = vpop.f32.mrb[5].mxu1  ;;  %v627_v4 = vmul.f32 %v1005_v11, %v1236_v51  ;;  %v391_v28 = vmul.f32 %v1025_v13, %v1164_v17  ;;  %v1285_v30 = vmul.f32 %v1025_v13, %v597_v49 }
  0xe7   :  { %v399_v20 = vadd.f32 %v398_v62, %v368_v41  ;;  %v655_v21 = vadd.f32 %v654_v52, %v624_v42  ;;  %v444_v24 = vadd.f32 %v443_v6, %v388_v36  ;;  %v1006_v18 = vpop.f32.mrb[6].mxu0  ;;  %v1281_v22 = vpop.f32.mrb[6].mxu1  ;;  %v369_v25 = vmul.f32 %v254_v57, %v1154_v15 }
  0xe8   :  { %v700_v26 = vadd.f32 %v699_v61, %v644_v44  ;;  %v257_v27 = vpop.f32.mrb[7].mxu0  ;;  %v337_v29 = vpop.f32.mrb[7].mxu1  ;;  %v625_v34 = vmul.f32 %v1228_v46, %v254_v57  ;;  %v372_v51 = vmul.f32 %v1006_v18, %v1171_v19  ;;  %v628_v41 = vmul.f32 %v1006_v18, %v1250_v60 }
  0xe9   :  { %v400_v31 = vrot.slane %v399_v20, 4  ;;  %v656_v9 = vrot.slane %v655_v21, 4  ;;  %v445_v32 = vrot.slane %v444_v24, 4  ;;  %v370_v33 = vmul.f32 %v257_v27, %v1159_v16 }
  0xea   :  { %v701_v35 = vrot.slane %v700_v26, 4  ;;  %v626_v36 = vmul.f32 %v1230_v47, %v257_v27  ;;  %v389_v49 = vmul.f32 %v334_v10, %v1154_v15  ;;  %v390_v46 = vmul.f32 %v337_v29, %v1159_v16 }
  0xeb   :  { %v401_v37 = vadd.f32 %v400_v31, %v399_v20  ;;  %v657_v38 = vadd.f32 %v656_v9, %v655_v21  ;;  %v446_v39 = vadd.f32 %v445_v32, %v444_v24  ;;  %v406_v40 = vadd.f32 %v370_v33, %v369_v25 }
  0xec   :  { %v702_v42 = vadd.f32 %v701_v35, %v700_v26  ;;  %v662_v44 = vadd.f32 %v626_v36, %v625_v34  ;;  %v645_v20 = vmul.f32 %v1258_v2, %v334_v10  ;;  %v392_v26 = vmul.f32 %v1281_v22, %v1171_v19 }
  0xed   :  { %v402_v62 = vrot.slane %v401_v37, 2  ;;  %v658_v52 = vrot.slane %v657_v38, 2  ;;  %v407_v6 = vadd.f32 %v406_v40, %v371_v14  ;;  %v1009_v11 = vpop.f32.mrb[8].mxu0  ;;  %v1294_v61 = vpop.f32.mrb[8].mxu1  ;;  %v447_v13 = vrot.slane %v446_v39, 2 }
  0xee   :  { %v703_v47 = vrot.slane %v702_v42, 2  ;;  %v663_v57 = vadd.f32 %v662_v44, %v627_v4  ;;  %v270_v21 = vpop.f32.mrb[9].mxu0  ;;  %v350_v24 = vpop.f32.mrb[9].mxu1  ;;  %v375_v32 = vmul.f32 %v1009_v11, %v1164_v17  ;;  %v631_v33 = vmul.f32 %v1009_v11, %v1244_v56 }
  0xef   :  { %v403_v60 = vadd.f32 %v402_v62, %v401_v37  ;;  %v659_v18 = vadd.f32 %v658_v52, %v657_v38  ;;  %v408_v25 = vadd.f32 %v407_v6, %v372_v51  ;;  %v1010_v27 = vpop.f32.mrb[10].mxu0  ;;  %v1299_v14 = vpop.f32.mrb[10].mxu1  ;;  %v451_v36 = vadd.f32 %v390_v46, %v389_v49 }
  0xf0   :  { %v704_v31 = vadd.f32 %v703_v47, %v702_v42  ;;  %v664_v9 = vadd.f32 %v663_v57, %v628_v41  ;;  %v273_v4 = vpop.f32.mrb[11].mxu0  ;;  %v353_v34 = vpop.f32.mrb[11].mxu1  ;;  %v1303_v37 = vadd.f32 %v447_v13, %v446_v39  ;;  %v646_v40 = vmul.f32 %v1256_v1, %v337_v29 }
  0xf1   :  { %v404_v2 = vrot.slane %v403_v60, 1  ;;  %v660_v10 = vrot.slane %v659_v18, 1  ;;  %v409_v35 = vrot.slane %v408_v25, 4  ;;  %v373_v41 = vmul.f32 %v270_v21, %v1154_v15 }
  0xf2   :  { %v705_v51 = vrot.slane %v704_v31, 1  ;;  %v665_v38 = vrot.slane %v664_v9, 4  ;;  %v452_v42 = vadd.f32 %v451_v36, %v391_v28  ;;  %vm805_vm2 = vcmp.eq.s32.totalorder %v1278_v23, %v1143_v12 }
  0xf3   :  { %v661_v44 = vadd.f32 %v660_v10, %v659_v18  ;;  %v410_v62 = vadd.f32 %v409_v35, %v408_v25  ;;  %v1309_v56 = vadd.f32 %v404_v2, %v403_v60  ;;  %v629_v6 = vmul.f32 %v1232_v48, %v270_v21 }
  0xf4   :  { %v666_v52 = vadd.f32 %v665_v38, %v664_v9  ;;  %v707_v49 = vadd.f32 %v646_v40, %v645_v20  ;;  %v453_v46 = vadd.f32 %v452_v42, %v392_v26  ;;  %v374_v1 = vmul.f32 %v273_v4, %v1159_v16 }
  0xf5   :  { %v1312_v39 = vmul.f32 2.0, %v661_v44  ;;  %v411_v11 = vrot.slane %v410_v62, 2  ;;  %v1013_v29 = vpop.f32.mrb[12].mxu0  ;;  %v1315_v13 = vpop.f32.mrb[12].mxu1  ;;  %v706_v47 = vadd.f32 %v705_v51, %v704_v31  ;;  %v376_v57 = vmul.f32 %v1010_v27, %v1171_v19 }
  0xf6   :  { %v667_v28 = vrot.slane %v666_v52, 2  ;;  %v630_v60 = vmul.f32 %v1234_v50, %v273_v4  ;;  %v286_v18 = vpop.f32.mrb[13].mxu0  ;;  %v1041_v25 = vpop.f32.mrb[13].mxu1  ;;  %v454_v21 = vrot.slane %v453_v46, 4  ;;  %v415_v9 = vadd.f32 %v374_v1, %v373_v41 }
  0xf7   :  { %v843_v48 = vsub.f32 %v1309_v56, %v1312_v39  ;;  %v412_v20 = vadd.f32 %v411_v11, %v410_v62  ;;  %v1014_v26 = vpop.f32.mrb[14].mxu0  ;;  %v393_v35 = vmul.f32 %v350_v24, %v1154_v15  ;;  %v649_v31 = vmul.f32 %v1262_v5, %v350_v24 }
  0xf8   :  { %v668_v2 = vadd.f32 %v667_v28, %v666_v52  ;;  %v671_v10 = vadd.f32 %v630_v60, %v629_v6  ;;  %v289_v36 = vpop.f32.mrb[15].mxu0  ;;  %v632_v38 = vmul.f32 %v1010_v27, %v1254_v0  ;;  %v416_v50 = vadd.f32 %v415_v9, %v375_v32 }
  0xf9   :  { %v413_v51 = vrot.slane %v412_v20, 1  ;;  %v395_v4 = vmul.f32 %v1294_v61, %v1164_v17  ;;  %v394_v62 = vmul.f32 %v353_v34, %v1159_v16  ;;  %v650_v41 = vmul.f32 %v1266_v8, %v353_v34 }
  0xfa   :  { %v669_v40 = vrot.slane %v668_v2, 1  ;;  %v672_v44 = vadd.f32 %v671_v10, %v631_v33  ;;  %v1328_v42 = vmul.f32 2.0, %v706_v47  ;;  %v1330_v52 = vadd.f32 %v454_v21, %v453_v46 }
  0xfb   :  { %v417_v6 = vadd.f32 %v416_v50, %v376_v57  ;;  %v396_v5 = vmul.f32 %v1299_v14, %v1171_v19  ;;  %v460_v27 = vadd.f32 %v394_v62, %v393_v35  ;;  %v716_v32 = vadd.f32 %v650_v41, %v649_v31 }
  0xfc   :  { %v670_v24 = vadd.f32 %v669_v40, %v668_v2  ;;  %v673_v0 = vadd.f32 %v672_v44, %v632_v38  ;;  %v1334_v11 = vadd.f32 %v413_v51, %v412_v20  ;;  %v379_v33 = vmul.f32 %v1013_v29, %v1164_v17  ;;  %v616_v40 = vpop.permute.xlu1 %615 }
  0xfd   :  { %v418_v1 = vrot.slane %v417_v6, 4  ;;  %v635_v28 = vmul.f32 %v1013_v29, %v1248_v59  ;;  %v1017_v8 = vpop.f32.mrb[16].mxu0  ;;  %v461_v47 = vadd.f32 %v460_v27, %v395_v4  ;;  %v832_v57 = vsel %vm805_vm2, %v1315_v13, 0.0 }
  0xfe   :  { %v1338_v34 = vmul.f32 2.0, %v670_v24  ;;  %v674_v46 = vrot.slane %v673_v0, 4  ;;  %v302_v60 = vpop.f32.mrb[17].mxu0  ;;  %v377_v20 = vmul.f32 %v286_v18, %v1154_v15  ;;  %v633_v21 = vmul.f32 %v1240_v54, %v286_v18  ;;  %833 = vadd.xlane.f32.xlu1 %v832_v57 }
  0xff   :  { %v419_v25 = vadd.f32 %v418_v1, %v417_v6  ;;  %v1347_v9 = vadd.f32 %v707_v49, %v1285_v30  ;;  %v1018_v59 = vpop.f32.mrb[18].mxu0  ;;  %v462_v10 = vadd.f32 %v461_v47, %v396_v5  ;;  %v378_v35 = vmul.f32 %v289_v36, %v1159_v16 }
 0x100   :  { %v844_v29 = vsub.f32 %v1334_v11, %v1338_v34  ;;  %v675_v2 = vadd.f32 %v674_v46, %v673_v0  ;;  %v305_v31 = vpop.f32.mrb[19].mxu0  ;;  %v380_v38 = vmul.f32 %v1014_v26, %v1171_v19  ;;  %v636_v50 = vmul.f32 %v1014_v26, %v1260_v3 }
 0x101   :  { %v420_v51 = vrot.slane %v419_v25, 2  ;;  %v634_v54 = vmul.f32 %v1238_v53, %v289_v36  ;;  %v424_v49 = vadd.f32 %v378_v35, %v377_v20  ;;  %v383_v18 = vmul.f32 %v1017_v8, %v1164_v17 }
 0x102   :  { %v676_v30 = vrot.slane %v675_v2, 2  ;;  %v639_v4 = vmul.f32 %v1017_v8, %v1252_v63  ;;  %v463_v62 = vrot.slane %v462_v10, 4  ;;  %v381_v6 = vmul.f32 %v302_v60, %v1154_v15 }
 0x103   :  { %v421_v44 = vadd.f32 %v420_v51, %v419_v25  ;;  %v680_v41 = vadd.f32 %v634_v54, %v633_v21  ;;  %v425_v24 = vadd.f32 %v424_v49, %v379_v33  ;;  %v637_v0 = vmul.f32 %v1242_v55, %v302_v60 }
 0x104   :  { %v677_v5 = vadd.f32 %v676_v30, %v675_v2  ;;  %v384_v3 = vmul.f32 %v1018_v59, %v1171_v19  ;;  %v651_v36 = vmul.f32 %v1294_v61, %v616_v40  ;;  %v382_v17 = vmul.f32 %v305_v31, %v1159_v16 }
 0x105   :  { %v422_v53 = vrot.slane %v421_v44, 1  ;;  %v681_v26 = vadd.f32 %v680_v41, %v635_v28  ;;  %v426_v63 = vadd.f32 %v425_v24, %v380_v38  ;;  %v638_v1 = vmul.f32 %v1246_v58, %v305_v31 }
 0x106   :  { %v678_v27 = vrot.slane %v677_v5, 1  ;;  %v449_v8 = vrot.slane %v1303_v37, 1  ;;  %v464_v46 = vadd.f32 %v463_v62, %v462_v10  ;;  %v1364_v47 = vadd.f32 %v716_v32, %v651_v36 }
 0x107   :  { %v682_v15 = vadd.f32 %v681_v26, %v636_v50  ;;  %v433_v33 = vadd.f32 %v382_v17, %v381_v6  ;;  %v1366_v55 = vadd.f32 %v422_v53, %v421_v44  ;;  %v427_v57 = vrot.slane %v426_v63, 4 }
 0x108   :  { %v679_v19 = vadd.f32 %v678_v27, %v677_v5  ;;  %v689_v28 = vadd.f32 %v638_v1, %v637_v0  ;;  %v640_v61 = vmul.f32 %v1018_v59, %v1264_v7  ;;  %v1370_v25 = vadd.f32 %v449_v8, %v1303_v37 }
 0x109   :  { %v683_v60 = vrot.slane %v682_v15, 4  ;;  %v434_v16 = vadd.f32 %v433_v33, %v383_v18  ;;  %v428_v20 = vadd.f32 %v427_v57, %v426_v63  ;;  %v815_v32 = vsel %vm814_vm3, %v1334_v11, %v1309_v56 }
 0x10a   :  { %v1372_v58 = vmul.f32 2.0, %v679_v19  ;;  %v690_v21 = vadd.f32 %v689_v28, %v639_v4  ;;  %v817_v7 = vsel %vm816_vm4, %v1366_v55, %v815_v32  ;;  %v456_v37 = vrot.slane %v1330_v52, 2 }
 0x10b   :  { %v684_v2 = vadd.f32 %v683_v60, %v682_v15  ;;  %v435_v10 = vadd.f32 %v434_v16, %v384_v3  ;;  %v429_v31 = vrot.slane %v428_v20, 2  ;;  %v465_v30 = vrot.slane %v464_v46, 2 }
 0x10c   :  { %v845_v35 = vsub.f32 %v1366_v55, %v1372_v58  ;;  %v691_v51 = vadd.f32 %v690_v21, %v640_v61  ;;  %v848_v49 = vsub.f32 %v1370_v25, %v1328_v42  ;;  %v457_v6 = vadd.f32 %v456_v37, %v1330_v52 }
 0x10d   :  { %v685_v59 = vrot.slane %v684_v2, 2  ;;  %v436_v38 = vrot.slane %v435_v10, 4  ;;  %v430_v50 = vadd.f32 %v429_v31, %v428_v20  ;;  %v466_v0 = vadd.f32 %v465_v30, %v464_v46 }
 0x10e   :  { %v692_v54 = vrot.slane %v691_v51, 4  ;;  %v458_v63 = vrot.slane %v457_v6, 1 }
 0x10f   :  { %v686_v18 = vadd.f32 %v685_v59, %v684_v2  ;;  %v437_v4 = vadd.f32 %v436_v38, %v435_v10  ;;  %v431_v40 = vrot.slane %v430_v50, 1  ;;  %619 = vbcast.lane.b32.xlu1 %v1222_v45, 280  ;;  %v467_v8 = vrot.slane %v466_v0, 1 }
 0x110   :  { %v693_v44 = vadd.f32 %v692_v54, %v691_v51  ;;  %v1387_v52 = vadd.f32 %v458_v63, %v457_v6 }
 0x111   :  { %v687_v62 = vrot.slane %v686_v18, 1  ;;  %v438_v41 = vrot.slane %v437_v4, 2  ;;  %v432_v5 = vadd.f32 %v431_v40, %v430_v50  ;;  %v468_v57 = vadd.f32 %v467_v8, %v466_v0 }
 0x112   :  { %v694_v24 = vrot.slane %v693_v44, 2 }
 0x113   :  { %v688_v3 = vadd.f32 %v687_v62, %v686_v18  ;;  %v439_v53 = vadd.f32 %v438_v41, %v437_v4  ;;  %v819_v36 = vsel %vm818_vm5, %v432_v5, %v817_v7 }
 0x114   :  { %v695_v26 = vadd.f32 %v694_v24, %v693_v44 }
 0x115   :  { %v838_v17 = vmul.f32 2.0, %v688_v3  ;;  %v440_v27 = vrot.slane %v439_v53, 1 }
 0x116   :  { %v696_v1 = vrot.slane %v695_v26, 1 }
 0x117   :  { %v846_v45 = vsub.f32 %v432_v5, %v838_v17  ;;  %v441_v15 = vadd.f32 %v440_v27, %v439_v53 }
 0x118   :  { %v697_v33 = vadd.f32 %v696_v1, %v695_v26 }
 0x119   :  { %v821_v46 = vsel %vm820_vm6, %v441_v15, %v819_v36 }
 0x11a   :  { %v839_v19 = vmul.f32 2.0, %v697_v33  ;;  %v823_v28 = vsel %vm822_vm7, %v1370_v25, %v821_v46 }
 0x11b   :  { %v825_v60 = vsel %vm824_vm8, %v1387_v52, %v823_v28 }
 0x11c   :  { %v847_v61 = vsub.f32 %v441_v15, %v839_v19  ;;  %v827_v16 = vsel %vm826_vm9, %v468_v57, %v825_v60 }
 0x11d   :  { %v829_v20 = vsel %vm805_vm2, %v827_v16, 0.0 }
 0x11e   :  { %830 = vadd.xlane.f32.xlu0 %v829_v20 }
 0x134   :  { %600 = vbcast.lane.b32.xlu0 %v1217_v43, 280 }
 0x18b   :  { %v834_v21 = vpop.xlane.xlu1 %833 }
 0x18c   :  { %v875_v38 = vsub.f32 %v1315_v13, %v834_v21 }
 0x18e   :  { %v1402_v54 = vmul.f32 0.5, %v875_v38 }
 0x18f   :  { %v620_v32 = vpop.permute.xlu1 %619 }
 0x190   :  { %v652_v2 = vmul.f32 %v1299_v14, %v620_v32  ;;  %v886_v23 = vrot.slane %v1402_v54, 1  ;;  %v887_v43 = vrot.slane %v1402_v54, 2  ;;  %v888_v30 = vrot.slane %v1402_v54, 3 }
 0x191   :  { %v889_v14 = vrot.slane %v1402_v54, 4  ;;  %v892_v26 = vrot.slane %v1402_v54, 7 }
 0x192   :  { %v718_v10 = vadd.f32 %v1364_v47, %v652_v2  ;;  %v890_v47 = vrot.slane %v1402_v54, 5 }
 0x194   :  { %v719_v31 = vrot.slane %v718_v10, 4 }
 0x196   :  { %v720_v51 = vadd.f32 %v719_v31, %v718_v10 }
 0x198   :  { %v721_v7 = vrot.slane %v720_v51, 2 }
 0x19a   :  { %v722_v37 = vadd.f32 %v721_v7, %v720_v51 }
 0x19c   :  { %v723_v59 = vrot.slane %v722_v37, 1 }
 0x19e   :  { %v724_v50 = vadd.f32 %v723_v59, %v722_v37  ;;  %v891_v59 = vrot.slane %v1402_v54, 6 }
 0x1a0   :  { %v842_v12 = vmul.f32 2.0, %v724_v50 }
 0x1a2   :  { %v850_v13 = vsub.f32 %v468_v57, %v842_v12 }
 0x1ab   :  { %v831_v18 = vpop.xlane.xlu0 %830 }
 0x1ac   :  { %v852_v4 = vrot.slane %v831_v18, 1  ;;  %v853_v40 = vrot.slane %v831_v18, 2  ;;  %v854_v44 = vrot.slane %v831_v18, 3  ;;  %v855_v62 = vrot.slane %v831_v18, 4 }
 0x1ad   :  { %v856_v41 = vrot.slane %v831_v18, 5  ;;  %v858_v6 = vrot.slane %v831_v18, 7  ;;  %v867_v5 = vadd.f32 %v843_v48, %v831_v18  ;;  %v857_v51 = vrot.slane %v831_v18, 6 }
 0x1ae   :  { %v868_v24 = vadd.f32 %v852_v4, %v844_v29  ;;  %v869_v0 = vadd.f32 %v853_v40, %v845_v35  ;;  %v870_v3 = vadd.f32 %v854_v44, %v846_v45  ;;  %v871_v53 = vadd.f32 %v855_v62, %v847_v61 }
 0x1af   :  { %v872_v36 = vadd.f32 %v856_v41, %v848_v49  ;;  %v874_v17 = vadd.f32 %v858_v6, %v850_v13  ;;  %v876_v27 = vmul.f32 0.25, %v867_v5  ;;  %v601_v56 = vpop.permute.xlu0 %600 }
 0x1b0   :  { %v877_v39 = vmul.f32 0.25, %v868_v24  ;;  %v878_v48 = vmul.f32 0.25, %v869_v0  ;;  %v879_v63 = vmul.f32 0.25, %v870_v3  ;;  %v880_v11 = vmul.f32 0.25, %v871_v53 }
 0x1b1   :  { %v881_v34 = vmul.f32 0.25, %v872_v36  ;;  %v883_v29 = vmul.f32 0.25, %v874_v17  ;;  %v901_v55 = vadd.f32 %v1402_v54, %v876_v27  ;;  %v648_v58 = vmul.f32 %v1281_v22, %v601_v56 }
 0x1b2   :  { %v902_v35 = vadd.f32 %v886_v23, %v877_v39  ;;  %v903_v1 = vadd.f32 %v887_v43, %v878_v48  ;;  %v904_v8 = vadd.f32 %v888_v30, %v879_v63  ;;  %v905_v45 = vadd.f32 %v889_v14, %v880_v11 }
 0x1b3   :  { %v906_v15 = vadd.f32 %v890_v47, %v881_v34  ;;  %v908_v42 = vadd.f32 %v892_v26, %v883_v29  ;;  %v709_v25 = vadd.f32 %v1347_v9, %v648_v58 }
 0x1b4   :  { %v917_v49 = vrot.slane %v902_v35, 7  ;;  %v919_v33 = vrot.slane %v903_v1, 6  ;;  %v921_v57 = vrot.slane %v904_v8, 5  ;;  %v923_v60 = vrot.slane %v905_v45, 4 }
 0x1b5   :  { %v710_v46 = vrot.slane %v709_v25, 4  ;;  %v925_v16 = vrot.slane %v906_v15, 3  ;;  %v929_v23 = vrot.slane %v908_v42, 1 }
 0x1b6   :  { %v918_v19 = vsel %vm814_vm3, %v917_v49, %v901_v55 }
 0x1b7   :  { %v920_v28 = vsel %vm816_vm4, %v919_v33, %v918_v19  ;;  %v711_v61 = vadd.f32 %v710_v46, %v709_v25 }
 0x1b8   :  { %v922_v22 = vsel %vm818_vm5, %v921_v57, %v920_v28 }
 0x1b9   :  { %v924_v20 = vsel %vm820_vm6, %v923_v60, %v922_v22  ;;  %v712_v21 = vrot.slane %v711_v61, 2 }
 0x1ba   :  { %v926_v32 = vsel %vm822_vm7, %v925_v16, %v924_v20 }
 0x1bb   :  { %v713_v2 = vadd.f32 %v712_v21, %v711_v61 }
 0x1bd   :  { %v714_v9 = vrot.slane %v713_v2, 1 }
 0x1bf   :  { %v715_v10 = vadd.f32 %v714_v9, %v713_v2 }
 0x1c1   :  { %v841_v31 = vmul.f32 2.0, %v715_v10 }
 0x1c3   :  { %v849_v7 = vsub.f32 %v1387_v52, %v841_v31 }
 0x1c5   :  { %v873_v37 = vadd.f32 %v857_v51, %v849_v7 }
 0x1c7   :  { %v882_v38 = vmul.f32 0.25, %v873_v37 }
 0x1c9   :  { %v907_v50 = vadd.f32 %v891_v59, %v882_v38 }
 0x1cb   :  { %v927_v12 = vrot.slane %v907_v50, 2 }
 0x1cd   :  { %v928_v43 = vsel %vm824_vm8, %v927_v12, %v926_v32 }
 0x1ce   :  { %v930_v30 = vsel %vm826_vm9, %v929_v23, %v928_v43 }
 0x1cf   :  { %932 = vst [vmem:[%s1442_s5] sm:$0xff] %v930_v30 }

</bundles_post_ra>
